<compile_context>
chip_gen: v5e
topology: v5e:2x2
jax: 0.10.0
libtpu: 0.0.40
codegen_flags: <defaults>
</compile_context>

<pallas_src>
import functools
import math

import jax
import jax.numpy as jnp
from jax import lax
from jax.experimental import pallas as pl
from jax.experimental.pallas import tpu as pltpu

LANES = 128
SUBLANES = 8
MAX_TILE_ROWS = 2048   # (2048, 128) f32 block = 1 MiB per input per buffer
NUM_SHARDS = 2         # leading "parallel" grid axis (both TCs on v7x)


def _round_up(a, b):
    return ((a + b - 1) // b) * b


def _fold_to_vreg(x):
    """(tile_rows, 128) -> (8, 128) partial sum.

    The reshape keeps the (sublane, lane) = (8, 128) minor tile intact, so it
    is layout-free; the reduction over the leading axis is plain elementwise
    VPU adds across vreg groups (no cross-lane XLU work).
    """
    return jnp.sum(x.reshape(-1, SUBLANES, LANES), axis=0)


def _bce_kernel(*refs, n_elem, tile_rows, steps_per_shard, has_mask,
                needs_valid_mask):
    if has_mask:
        p_ref, g_ref, m_ref, lsum_ref, msum_ref, acc_l, acc_m = refs
    else:
        p_ref, g_ref, lsum_ref, acc_l = refs
        m_ref = msum_ref = acc_m = None

    s = pl.program_id(0)   # shard ("parallel")
    i = pl.program_id(1)   # step within shard ("arbitrary")

    @pl.when(i == 0)
    def _():
        acc_l[...] = jnp.zeros_like(acc_l)
        if has_mask:
            acc_m[...] = jnp.zeros_like(acc_m)

    x = p_ref[...].astype(jnp.float32)
    z = g_ref[...].astype(jnp.float32)
    if has_mask:
        m = m_ref[...].astype(jnp.float32)

    valid = None
    if needs_valid_mask:
        # Un-clamped logical block index -> global element index for validity.
        # (int32 indexing; fine for < 2^31 elements.)
        blk = s * steps_per_shard + i
        row0 = blk * tile_rows
        row_ids = lax.broadcasted_iota(jnp.int32, (tile_rows, LANES), 0) + row0
        lane_ids = lax.broadcasted_iota(jnp.int32, (tile_rows, LANES), 1)
        valid = (row_ids * LANES + lane_ids) < n_elem
        # Zero out padding / over-shot rows before the transcendentals so no
        # garbage can produce Inf/NaN.
        x = jnp.where(valid, x, 0.0)
        z = jnp.where(valid, z, 0.0)
        if has_mask:
            m = jnp.where(valid, m, 0.0)

    # Numerically stable BCE-with-logits (same as torch):
    #   loss = max(x, 0) - x*z + log(1 + exp(-|x|))
    loss = jnp.maximum(x, 0.0) - x * z + jnp.log1p(jnp.exp(-jnp.abs(x)))

    if has_mask:
        acc_l[...] += _fold_to_vreg(loss * m)
        acc_m[...] += _fold_to_vreg(m)
    else:
        if needs_valid_mask:
            loss = jnp.where(valid, loss, 0.0)
        acc_l[...] += _fold_to_vreg(loss)

    @pl.when(i == pl.num_programs(1) - 1)
    def _():
        lsum_ref[...] = acc_l[...].reshape(1, SUBLANES, LANES)
        if has_mask:
            msum_ref[...] = acc_m[...].reshape(1, SUBLANES, LANES)


def _flat_2d(a):
    """Flatten to (rows, 128) without padding when size % 128 == 0 (bitcast)."""
    flat = a.reshape(-1)
    rem = flat.shape[0] % LANES
    if rem:
        # Rare fallback (element count not a multiple of 128); padded values
        # are excluded by the in-kernel validity mask / zero mask values.
        flat = jnp.pad(flat, (0, LANES - rem))
    return flat.reshape(-1, LANES)


def _run_bce(prediction, ground_truth, mask):
    has_mask = mask is not None
    n_elem = math.prod(prediction.shape)

    p2 = _flat_2d(prediction)
    g2 = _flat_2d(ground_truth)
    inputs = [p2, g2]
    if has_mask:
        inputs.append(_flat_2d(mask))

    rows_total = p2.shape[0]
    tile_rows = min(MAX_TILE_ROWS, _round_up(rows_total, SUBLANES))
    nblocks = pl.cdiv(rows_total, tile_rows)
    num_shards = NUM_SHARDS if nblocks >= NUM_SHARDS else 1
    steps = pl.cdiv(nblocks, num_shards)

    # Static fast-path flags: skip the clamp / validity mask entirely when the
    # grid covers the data exactly (typical NCHW sizes).
    needs_clamp = (num_shards * steps) != nblocks
    needs_valid_mask = (num_shards * steps * tile_rows * LANES) != n_elem

    if needs_clamp:
        def in_map(s, i):
            # Clamp so over-shot shards re-read the last block; the in-kernel
            # validity mask (based on the *unclamped* index) zeroes them out.
            return (jnp.minimum(s * steps + i, nblocks - 1), 0)
    else:
        def in_map(s, i):
            return (s * steps + i, 0)

    tile_spec = pl.BlockSpec((tile_rows, LANES), in_map)
    # Lane/sublane-aligned per-shard partial-sum output (written once per
    # shard at the final inner step); final reduction happens in the wrapper.
    out_spec = pl.BlockSpec((1, SUBLANES, LANES), lambda s, i: (s, 0, 0))
    out_shape = jax.ShapeDtypeStruct((num_shards, SUBLANES, LANES), jnp.float32)

    kernel = functools.partial(
        _bce_kernel,
        n_elem=n_elem,
        tile_rows=tile_rows,
        steps_per_shard=steps,
        has_mask=has_mask,
        needs_valid_mask=needs_valid_mask,
    )

    if has_mask:
        out_shape_arg = (out_shape, out_shape)
        out_specs_arg = (out_spec, out_spec)
        scratch = [
            pltpu.VMEM((SUBLANES, LANES), jnp.float32),
            pltpu.VMEM((SUBLANES, LANES), jnp.float32),
        ]
    else:
        out_shape_arg = out_shape
        out_specs_arg = out_spec
        scratch = [pltpu.VMEM((SUBLANES, LANES), jnp.float32)]

    outs = pl.pallas_call(
        kernel,
        out_shape=out_shape_arg,
        grid_spec=pltpu.PrefetchScalarGridSpec(
            num_scalar_prefetch=0,
            grid=(num_shards, steps),
            in_specs=[tile_spec] * len(inputs),
            out_specs=out_specs_arg,
            scratch_shapes=scratch,
        ),
        compiler_params=pltpu.CompilerParams(
            dimension_semantics=("parallel", "arbitrary")
        ),
    )(*inputs)

    if has_mask:
        lsum, msum = outs
        return (jnp.sum(lsum) / jnp.sum(msum)).astype(jnp.float32)
    return (jnp.sum(outs) / jnp.float32(n_elem)).astype(jnp.float32)


_run_bce_jit = jax.jit(_run_bce)


def bce_loss(prediction, ground_truth, mask=None):
    """JAX/Pallas equivalent of Loss('BCE').forward (NCHW tensors)."""
    ph, pw = prediction.shape[2], prediction.shape[3]
    gh, gw = ground_truth.shape[2], ground_truth.shape[3]
    if ph < gh or pw < gw:
        y = int((gh - ph) / 2)
        x = int((gw - pw) / 2)
        ground_truth = ground_truth[:, :, y:y + ph, x:x + pw]
        if mask is not None:
            mask = mask[:, :, y:y + ph, x:x + pw]
    return _run_bce_jit(prediction, ground_truth, mask)


def _bce_ref(prediction, ground_truth, mask=None):
    """Pure-JAX reference mirroring torch semantics (for sanity check)."""
    ph, pw = prediction.shape[2], prediction.shape[3]
    gh, gw = ground_truth.shape[2], ground_truth.shape[3]
    if ph < gh or pw < gw:
        y = int((gh - ph) / 2)
        x = int((gw - pw) / 2)
        ground_truth = ground_truth[:, :, y:y + ph, x:x + pw]
        if mask is not None:
            mask = mask[:, :, y:y + ph, x:x + pw]
    x_ = prediction.astype(jnp.float32)
    z_ = ground_truth.astype(jnp.float32)
    loss = jnp.maximum(x_, 0.0) - x_ * z_ + jnp.log1p(jnp.exp(-jnp.abs(x_)))
    if mask is not None:
        m = mask.astype(jnp.float32)
        return (loss * m).sum() / m.sum()
    return loss.mean()


if __name__ == "__main__":
    key = jax.random.PRNGKey(0)
    k1, k2, k3, k4, k5, k6 = jax.random.split(key, 6)

    # --- small case: prediction smaller than ground_truth (center-crop path) ---
    prediction = jax.random.normal(k1, (2, 4, 16, 16), dtype=jnp.float32)
    ground_truth = (jax.random.uniform(k2, (2, 4, 20, 20)) > 0.5).astype(jnp.float32)
    mask = (jax.random.uniform(k3, (2, 4, 20, 20)) > 0.3).astype(jnp.float32)

    out_masked = bce_loss(prediction, ground_truth, mask)
    jax.block_until_ready(out_masked)
    ref_masked = _bce_ref(prediction, ground_truth, mask)
    assert jnp.allclose(out_masked, ref_masked, rtol=1e-5, atol=1e-5), (
        out_masked, ref_masked)

    out_plain = bce_loss(prediction, ground_truth)
    jax.block_until_ready(out_plain)
    ref_plain = _bce_ref(prediction, ground_truth)
    assert jnp.allclose(out_plain, ref_plain, rtol=1e-5, atol=1e-5), (
        out_plain, ref_plain)

    # --- larger case: exercises the sharded grid, edge block and in-kernel
    #     validity mask (2*8*128*144 elements -> 2304 rows, 2 blocks) ---
    p_big = jax.random.normal(k4, (2, 8, 128, 144), dtype=jnp.float32)
    g_big = (jax.random.uniform(k5, (2, 8, 128, 144)) > 0.5).astype(jnp.float32)
    m_big = (jax.random.uniform(k6, (2, 8, 128, 144)) > 0.3).astype(jnp.float32)

    out_big_m = bce_loss(p_big, g_big, m_big)
    jax.block_until_ready(out_big_m)
    ref_big_m = _bce_ref(p_big, g_big, m_big)
    assert jnp.allclose(out_big_m, ref_big_m, rtol=1e-4, atol=1e-6), (
        out_big_m, ref_big_m)

    out_big = bce_loss(p_big, g_big)
    jax.block_until_ready(out_big)
    ref_big = _bce_ref(p_big, g_big)
    assert jnp.allclose(out_big, ref_big, rtol=1e-4, atol=1e-6), (
        out_big, ref_big)

    print("KERNEL_OK")
</pallas_src>

<mosaic_0001>
module attributes {stable_mosaic.version = 11 : i64} {
  func.func @_bce_kernel(%arg0: i32, %arg1: i32, %arg2: memref<16x128xf32, #tpu.memory_space<vmem>>, %arg3: memref<16x128xf32, #tpu.memory_space<vmem>>, %arg4: memref<16x128xf32, #tpu.memory_space<vmem>>, %arg5: memref<1x8x128xf32, #tpu.memory_space<vmem>>, %arg6: memref<1x8x128xf32, #tpu.memory_space<vmem>>, %arg7: memref<8x128xf32, #tpu.memory_space<vmem>>, %arg8: memref<8x128xf32, #tpu.memory_space<vmem>>) attributes {dimension_semantics = [#tpu.dimension_semantics<parallel>, #tpu.dimension_semantics<arbitrary>], iteration_bounds = array<i64: 1, 1>, scalar_prefetch = 0 : i64, scratch_operands = 2 : i64, tpu.core_type = #tpu.core_type<tc>, window_params = [{transform_indices = @transform_0, window_bounds = array<i64: 16, 128>}, {transform_indices = @transform_1, window_bounds = array<i64: 16, 128>}, {transform_indices = @transform_2, window_bounds = array<i64: 16, 128>}, {transform_indices = @transform_3, window_bounds = array<i64: 1, 8, 128>}, {transform_indices = @transform_4, window_bounds = array<i64: 1, 8, 128>}]} {
    %c0_i32 = arith.constant 0 : i32
    %0 = arith.cmpi eq, %arg1, %c0_i32 : i32
    %1 = arith.extui %0 : i1 to i32
    %c0_i32_0 = arith.constant 0 : i32
    %2 = arith.cmpi ne, %1, %c0_i32_0 : i32
    scf.if %2 {
      %cst_19 = arith.constant 0.000000e+00 : f32
      %30 = vector.broadcast %cst_19 : f32 to vector<8x128xf32>
      %c0_20 = arith.constant 0 : index
      %c0_21 = arith.constant 0 : index
      %31 = vector.load %arg7[%c0_20, %c0_21] : memref<8x128xf32, #tpu.memory_space<vmem>>, vector<8x128xf32>
      tpu.vector_store %arg7[%c0_20, %c0_21], %30 {strides = array<i32>} : memref<8x128xf32, #tpu.memory_space<vmem>>, vector<8x128xf32>,
      %cst_22 = arith.constant 0.000000e+00 : f32
      %32 = vector.broadcast %cst_22 : f32 to vector<8x128xf32>
      %c0_23 = arith.constant 0 : index
      %c0_24 = arith.constant 0 : index
      %33 = vector.load %arg8[%c0_23, %c0_24] : memref<8x128xf32, #tpu.memory_space<vmem>>, vector<8x128xf32>
      tpu.vector_store %arg8[%c0_23, %c0_24], %32 {strides = array<i32>} : memref<8x128xf32, #tpu.memory_space<vmem>>, vector<8x128xf32>,
    } else {
    }
    %c0 = arith.constant 0 : index
    %c0_1 = arith.constant 0 : index
    %3 = vector.load %arg2[%c0, %c0_1] : memref<16x128xf32, #tpu.memory_space<vmem>>, vector<16x128xf32>
    %c0_2 = arith.constant 0 : index
    %c0_3 = arith.constant 0 : index
    %4 = vector.load %arg3[%c0_2, %c0_3] : memref<16x128xf32, #tpu.memory_space<vmem>>, vector<16x128xf32>
    %c0_4 = arith.constant 0 : index
    %c0_5 = arith.constant 0 : index
    %5 = vector.load %arg4[%c0_4, %c0_5] : memref<16x128xf32, #tpu.memory_space<vmem>>, vector<16x128xf32>
    %cst = arith.constant 0.000000e+00 : f32
    %6 = vector.broadcast %cst : f32 to vector<16x128xf32>
    %7 = arith.maximumf %3, %6 : vector<16x128xf32>
    %8 = arith.mulf %3, %4 : vector<16x128xf32>
    %9 = arith.subf %7, %8 : vector<16x128xf32>
    %10 = math.absf %3 : vector<16x128xf32>
    %cst_6 = arith.constant 0.000000e+00 : f32
    %11 = vector.broadcast %cst_6 : f32 to vector<16x128xf32>
    %12 = arith.subf %11, %10 : vector<16x128xf32>
    %13 = math.exp %12 : vector<16x128xf32>
    %14 = math.log1p %13 : vector<16x128xf32>
    %15 = arith.addf %9, %14 : vector<16x128xf32>
    %c0_7 = arith.constant 0 : index
    %c0_8 = arith.constant 0 : index
    %16 = vector.load %arg7[%c0_7, %c0_8] : memref<8x128xf32, #tpu.memory_space<vmem>>, vector<8x128xf32>
    %17 = arith.mulf %15, %5 : vector<16x128xf32>
    %18 = vector.shape_cast %17 : vector<16x128xf32> to vector<2x8x128xf32>
    %cst_9 = arith.constant dense<0.000000e+00> : vector<8x128xf32>
    %19 = vector.multi_reduction <add>, %18, %cst_9 [0] : vector<2x8x128xf32> to vector<8x128xf32>
    %20 = arith.addf %16, %19 : vector<8x128xf32>
    %c0_10 = arith.constant 0 : index
    %c0_11 = arith.constant 0 : index
    %21 = vector.load %arg7[%c0_10, %c0_11] : memref<8x128xf32, #tpu.memory_space<vmem>>, vector<8x128xf32>
    tpu.vector_store %arg7[%c0_10, %c0_11], %20 {strides = array<i32>} : memref<8x128xf32, #tpu.memory_space<vmem>>, vector<8x128xf32>,
    %c0_12 = arith.constant 0 : index
    %c0_13 = arith.constant 0 : index
    %22 = vector.load %arg8[%c0_12, %c0_13] : memref<8x128xf32, #tpu.memory_space<vmem>>, vector<8x128xf32>
    %23 = vector.shape_cast %5 : vector<16x128xf32> to vector<2x8x128xf32>
    %cst_14 = arith.constant dense<0.000000e+00> : vector<8x128xf32>
    %24 = vector.multi_reduction <add>, %23, %cst_14 [0] : vector<2x8x128xf32> to vector<8x128xf32>
    %25 = arith.addf %22, %24 : vector<8x128xf32>
    %c0_15 = arith.constant 0 : index
    %c0_16 = arith.constant 0 : index
    %26 = vector.load %arg8[%c0_15, %c0_16] : memref<8x128xf32, #tpu.memory_space<vmem>>, vector<8x128xf32>
    tpu.vector_store %arg8[%c0_15, %c0_16], %25 {strides = array<i32>} : memref<8x128xf32, #tpu.memory_space<vmem>>, vector<8x128xf32>,
    %c0_i32_17 = arith.constant 0 : i32
    %27 = arith.cmpi eq, %arg1, %c0_i32_17 : i32
    %28 = arith.extui %27 : i1 to i32
    %c0_i32_18 = arith.constant 0 : i32
    %29 = arith.cmpi ne, %28, %c0_i32_18 : i32
    scf.if %29 {
      %c0_19 = arith.constant 0 : index
      %c0_20 = arith.constant 0 : index
      %30 = vector.load %arg7[%c0_19, %c0_20] : memref<8x128xf32, #tpu.memory_space<vmem>>, vector<8x128xf32>
      %31 = vector.shape_cast %30 : vector<8x128xf32> to vector<1x8x128xf32>
      %c0_21 = arith.constant 0 : index
      %c0_22 = arith.constant 0 : index
      %c0_23 = arith.constant 0 : index
      %32 = vector.load %arg5[%c0_21, %c0_22, %c0_23] : memref<1x8x128xf32, #tpu.memory_space<vmem>>, vector<1x8x128xf32>
      tpu.vector_store %arg5[%c0_21, %c0_22, %c0_23], %31 {strides = array<i32>} : memref<1x8x128xf32, #tpu.memory_space<vmem>>, vector<1x8x128xf32>,
      %c0_24 = arith.constant 0 : index
      %c0_25 = arith.constant 0 : index
      %33 = vector.load %arg8[%c0_24, %c0_25] : memref<8x128xf32, #tpu.memory_space<vmem>>, vector<8x128xf32>
      %34 = vector.shape_cast %33 : vector<8x128xf32> to vector<1x8x128xf32>
      %c0_26 = arith.constant 0 : index
      %c0_27 = arith.constant 0 : index
      %c0_28 = arith.constant 0 : index
      %35 = vector.load %arg6[%c0_26, %c0_27, %c0_28] : memref<1x8x128xf32, #tpu.memory_space<vmem>>, vector<1x8x128xf32>
      tpu.vector_store %arg6[%c0_26, %c0_27, %c0_28], %34 {strides = array<i32>} : memref<1x8x128xf32, #tpu.memory_space<vmem>>, vector<1x8x128xf32>,
    } else {
    }
    return
  }
  func.func @transform_0(%arg0: i32, %arg1: i32) -> (i32, i32) {
    %c1_i32 = arith.constant 1 : i32
    %0 = arith.muli %arg0, %c1_i32 : i32
    %1 = arith.addi %0, %arg1 : i32
    %c0_i32 = arith.constant 0 : i32
    %c0_i32_0 = arith.constant 0 : i32
    return %1, %c0_i32 : i32, i32
  }
  func.func @transform_1(%arg0: i32, %arg1: i32) -> (i32, i32) {
    %c1_i32 = arith.constant 1 : i32
    %0 = arith.muli %arg0, %c1_i32 : i32
    %1 = arith.addi %0, %arg1 : i32
    %c0_i32 = arith.constant 0 : i32
    %c0_i32_0 = arith.constant 0 : i32
    return %1, %c0_i32 : i32, i32
  }
  func.func @transform_2(%arg0: i32, %arg1: i32) -> (i32, i32) {
    %c1_i32 = arith.constant 1 : i32
    %0 = arith.muli %arg0, %c1_i32 : i32
    %1 = arith.addi %0, %arg1 : i32
    %c0_i32 = arith.constant 0 : i32
    %c0_i32_0 = arith.constant 0 : i32
    return %1, %c0_i32 : i32, i32
  }
  func.func @transform_3(%arg0: i32, %arg1: i32) -> (i32, i32, i32) {
    %c0_i32 = arith.constant 0 : i32
    %c0_i32_0 = arith.constant 0 : i32
    %c0_i32_1 = arith.constant 0 : i32
    return %arg0, %c0_i32, %c0_i32_0 : i32, i32, i32
  }
  func.func @transform_4(%arg0: i32, %arg1: i32) -> (i32, i32, i32) {
    %c0_i32 = arith.constant 0 : i32
    %c0_i32_0 = arith.constant 0 : i32
    %c0_i32_1 = arith.constant 0 : i32
    return %arg0, %c0_i32, %c0_i32_0 : i32, i32, i32
  }
}

</mosaic_0001>

<bundles_post_ra>
// kernel: _run_bce.1
= control target key start
LH: loop header
LB: loop body
LE: loop exit
PB: predicated region body
PF: predicated region fallthrough
CT: control target
= control target key end

     0   :  { %s228_s0 = inlined_call_operand.vmem [shape: f32[16,128], index: 0, kind: input, shape index: {}]   ;;  %s229_s2 = inlined_call_operand.vmem [shape: f32[16,128], index: 2, kind: input, shape index: {}]   ;;  %s230_s4 = inlined_call_operand.vmem [shape: f32[1,8,128], index: 4, kind: output, shape index: {1}]   ;;  %s231_s1 = inlined_call_operand.vmem [shape: f32[16,128], index: 1, kind: input, shape index: {}]   ;;  %s232_s3 = inlined_call_operand.vmem [shape: f32[1,8,128], index: 3, kind: output, shape index: {0}]  }
   0x1   :  { %v88_v0 = vld [vmem:[%s228_s0] sm:$0xff]  ;;  %v89_v1 = vld [vmem:[%s228_s0 + $0x8] sm:$0xff] }
   0x2   :  { %v92_v2 = vld [vmem:[%s229_s2] sm:$0xff]  ;;  %v93_v3 = vld [vmem:[%s229_s2 + $0x8] sm:$0xff]  ;;  %v100_v4 = vand.u32 2147483647, %v88_v0  ;;  %v101_v5 = vand.u32 2147483647, %v89_v1 }
   0x3   :  { %v135_v6 = vadd.f32 %v93_v3, %v92_v2  ;;  %v90_v15 = vld [vmem:[%s231_s1] sm:$0xff]  ;;  %v91_v18 = vld [vmem:[%s231_s1 + $0x8] sm:$0xff]  ;;  %v94_v20 = vmax.f32 %v88_v0, 0.0  ;;  %v95_v24 = vmax.f32 %v89_v1, 0.0 }
   0x4   :  { %v102_v7 = vsub.f32 0.0, %v100_v4  ;;  %v103_v8 = vsub.f32 0.0, %v101_v5  ;;  %v96_v21 = vmul.f32 %v90_v15, %v88_v0  ;;  %v97_v25 = vmul.f32 %v91_v18, %v89_v1 }
   0x5   :  { %144 = vst [vmem:[%s230_s4] sm:$0xff] %v135_v6 }
   0x6   :  { %v104_v9 = vmul.f32 1.442695, %v102_v7  ;;  %v106_v10 = vmul.f32 1.442695, %v103_v8  ;;  %v98_v29 = vsub.f32 %v94_v20, %v96_v21  ;;  %v99_v32 = vsub.f32 %v95_v24, %v97_v25 }
   0x8   :  { %171 = vpow2.f32 %v104_v9 }
   0x9   :  { %173 = vpow2.f32 %v106_v10 }
   0xe   :  { %v172_v11 = vpop.eup %171 }
   0xf   :  { %v174_v12 = vpop.eup %173  ;;  %v108_v13 = vadd.f32 1.0, %v172_v11  ;;  %v111_v14 = vmul.f32 -0.5, %v172_v11  ;;  %v114_v22 = vand.u32 2147483647, %v172_v11 }
  0x10   :  { %v117_v16 = vadd.f32 1.0, %v174_v12  ;;  %v120_v17 = vmul.f32 -0.5, %v174_v12  ;;  %v123_v26 = vand.u32 2147483647, %v174_v12 }
  0x11   :  { %175 = vlog2.f32 %v108_v13  ;;  %v112_v19 = vadd.f32 1.0, %v111_v14  ;;  %vm115_vm0 = vcmp.lt.f32.partialorder %v114_v22, 0.0004427343 }
  0x12   :  { %177 = vlog2.f32 %v117_v16  ;;  %v121_v23 = vadd.f32 1.0, %v120_v17  ;;  %vm124_vm1 = vcmp.lt.f32.partialorder %v123_v26, 0.0004427343 }
  0x13   :  { %v113_v27 = vmul.f32 %v172_v11, %v112_v19 }
  0x14   :  { %v122_v30 = vmul.f32 %v174_v12, %v121_v23 }
  0x17   :  { %v176_v28 = vpop.eup %175 }
  0x18   :  { %v178_v31 = vpop.eup %177  ;;  %v110_v33 = vmul.f32 0.6931472, %v176_v28 }
  0x19   :  { %v119_v34 = vmul.f32 0.6931472, %v178_v31 }
  0x1a   :  { %v116_v35 = vsel %vm115_vm0, %v113_v27, %v110_v33 }
  0x1b   :  { %v125_v36 = vsel %vm124_vm1, %v122_v30, %v119_v34  ;;  %v126_v37 = vadd.f32 %v116_v35, %v98_v29 }
  0x1c   :  { %v127_v38 = vadd.f32 %v125_v36, %v99_v32 }
  0x1d   :  { %v129_v39 = vmul.f32 %v126_v37, %v92_v2 }
  0x1e   :  { %v130_v40 = vmul.f32 %v127_v38, %v93_v3 }
  0x20   :  { %v131_v41 = vadd.f32 %v130_v40, %v129_v39 }
  0x22   :  { %142 = vst [vmem:[%s232_s3] sm:$0xff] %v131_v41 }

</bundles_post_ra>
